<compile_context>
chip_gen: v5e
topology: v5e:2x2
jax: 0.10.0
libtpu: 0.0.40
codegen_flags: <defaults>
</compile_context>

<pallas_src>
import jax
import jax.numpy as jnp
from jax.experimental import pallas as pl
from jax.experimental.pallas import tpu as pltpu


def _round_up(n, m):
    return ((n + m - 1) // m) * m


# --------------------------------------------------------------------------
# Kernels
# --------------------------------------------------------------------------
def _rnn_cell_kernel(x_ref, h_ref, wih_ref, whh_ref, b_ref, o_ref):
    """Single step: o = tanh(x @ Wih + h @ Whh + b), f32 accumulate/epilogue."""
    cdt = wih_ref.dtype
    acc = jnp.dot(x_ref[...].astype(cdt), wih_ref[...],
                  preferred_element_type=jnp.float32)
    acc = acc + jnp.dot(h_ref[...].astype(cdt), whh_ref[...],
                        preferred_element_type=jnp.float32)
    o_ref[...] = jnp.tanh(acc + b_ref[...]).astype(o_ref.dtype)


def _rnn_seq_kernel(x_ref, h0_ref, wih_ref, whh_ref, b_ref, hs_ref, h_scr):
    """T fused steps: grid=(batch_tiles, T); hidden carried in f32 VMEM scratch."""
    cdt = wih_ref.dtype

    @pl.when(pl.program_id(1) == 0)
    def _():
        h_scr[...] = h0_ref[...].astype(jnp.float32)

    acc = jnp.dot(x_ref[0].astype(cdt), wih_ref[...],
                  preferred_element_type=jnp.float32)
    acc = acc + jnp.dot(h_scr[...].astype(cdt), whh_ref[...],
                        preferred_element_type=jnp.float32)
    h_new = jnp.tanh(acc + b_ref[...])          # f32 epilogue (v5e-safe)
    h_scr[...] = h_new                          # carry to next timestep
    hs_ref[0] = h_new.astype(hs_ref.dtype)      # per-step hidden output


# --------------------------------------------------------------------------
# Parameter packing (done once, outside the hot path)
# --------------------------------------------------------------------------
def pack_params(weight_ih, weight_hh, bias_ih, bias_hh,
                compute_dtype=jnp.bfloat16):
    """Pack parameters once: transpose, 128-pad, fuse biases, cast for the MXU.

    compute_dtype=bf16 is the recommended default on v6e/v7x (f32 accumulate
    and f32 tanh are kept in-kernel); use f32 for an exact path.
    Returns (w_ih_p (I_pad,H_pad), w_hh_p (H_pad,H_pad), b_p (1,H_pad) f32).
    """
    H, I = weight_ih.shape
    I_pad = _round_up(I, 128)
    H_pad = _round_up(H, 128)
    w_ih = jnp.pad(weight_ih.T, ((0, I_pad - I), (0, H_pad - H))).astype(compute_dtype)
    w_hh = jnp.pad(weight_hh.T, ((0, H_pad - H), (0, H_pad - H))).astype(compute_dtype)
    b = jnp.pad((bias_ih + bias_hh).astype(jnp.float32).reshape(1, H),
                ((0, 0), (0, H_pad - H)))
    return w_ih, w_hh, b


# --------------------------------------------------------------------------
# Spec / call helpers
# --------------------------------------------------------------------------
def _maybe_single_buffered_spec(block_shape, index_map, single_buffer):
    """BlockSpec for an operand whose block never changes across the grid.

    Single-buffering halves its VMEM footprint (important under v7x's 64 MiB);
    falls back to the default (double-buffered) spec if unsupported.
    """
    if single_buffer and hasattr(pl, "Buffered"):
        try:
            return pl.BlockSpec(block_shape, index_map,
                                pipeline_mode=pl.Buffered(1))
        except TypeError:  # older jax: no pipeline_mode kwarg
            pass
    return pl.BlockSpec(block_shape, index_map)


def _call_with_fallback(call_fn, want_single_buffer):
    if want_single_buffer:
        try:
            return call_fn(True)
        except Exception:
            pass  # Buffered(1) not supported by this jax/Mosaic -> retry default
    return call_fn(False)


# --------------------------------------------------------------------------
# Single-step cell (matches BaseRNNCell.forward)
# --------------------------------------------------------------------------
def base_rnn_cell(x, hidden, packed, *, block_b=256, block_h=None,
                  out_dtype=None, single_buffer_weights=True):
    """Single-timestep RNN cell forward.

    Args:
      x:      (B, input_size)
      hidden: (B, hidden_size)
      packed: output of pack_params() (pre-packed weights + fused bias)
      block_b: batch tile (256 is a good default on v6e; keep <=256 on v7x)
      block_h: optional output (H) tile; None = auto (splits only to keep both
               v7x TensorCores busy when the batch fills a single tile)
      out_dtype: output dtype (default x.dtype; pass bf16 if the consumer is
                 the next MXU step anyway to halve store/reload bytes)
    Returns:
      next_hidden: (B, hidden_size)
    """
    w_ih, w_hh, b = packed
    B, I = x.shape
    Bh, H = hidden.shape
    assert Bh == B
    I_pad, H_pad = w_ih.shape
    assert w_hh.shape == (H_pad, H_pad) and b.shape == (1, H_pad)
    assert I_pad >= I and H_pad >= H
    out_dtype = x.dtype if out_dtype is None else out_dtype

    # ---- Batch tiling --------------------------------------------------
    tb = min(block_b, _round_up(B, 8))
    B_pad = _round_up(B, tb)
    nb = B_pad // tb

    # ---- Output (H) tiling: only split when it keeps both TCs busy -----
    if block_h is None:
        if nb >= 2 or H_pad <= 128:
            th = H_pad
        elif (H_pad // 2) % 128 == 0:
            th = H_pad // 2
        else:
            th = 128
    else:
        th = max(128, min(_round_up(block_h, 128), H_pad))
        if H_pad % th:
            th = 128
    nh = H_pad // th
    weights_resident = (nh == 1)  # constant index_map -> 1 pipeline buffer ok

    # ---- Fast-path padding (skipped when already aligned) --------------
    x_p = x if (B_pad == B and I_pad == I) else jnp.pad(
        x, ((0, B_pad - B), (0, I_pad - I)))
    h_p = hidden if (B_pad == B and H_pad == H) else jnp.pad(
        hidden, ((0, B_pad - B), (0, H_pad - H)))

    cbytes = jnp.dtype(w_ih.dtype).itemsize
    xbytes = jnp.dtype(x.dtype).itemsize
    hbytes = jnp.dtype(hidden.dtype).itemsize
    obytes = jnp.dtype(out_dtype).itemsize

    def _footprint(w_bufs):
        return (w_bufs * ((I_pad + H_pad) * th * cbytes + th * 4)
                + 2 * tb * (I_pad * xbytes + H_pad * hbytes)
                + 2 * tb * th * obytes)

    cost = pl.CostEstimate(
        flops=2 * B_pad * (I_pad + H_pad) * H_pad,
        transcendentals=B_pad * H_pad,
        bytes_accessed=(B_pad * I_pad * xbytes + B_pad * H_pad * hbytes
                        + (I_pad + H_pad) * H_pad * cbytes + H_pad * 4
                        + B_pad * H_pad * obytes))

    def _call(use_single_buffer):
        w_bufs = 1 if use_single_buffer else 2
        vmem_limit = int(min(max(_footprint(w_bufs) + (4 << 20), 32 << 20),
                             128 << 20))

        def w_spec(shape):
            return _maybe_single_buffered_spec(shape, lambda i, j: (0, j),
                                               use_single_buffer)

        return pl.pallas_call(
            _rnn_cell_kernel,
            out_shape=jax.ShapeDtypeStruct((B_pad, H_pad), out_dtype),
            grid=(nb, nh),
            in_specs=[
                pl.BlockSpec((tb, I_pad), lambda i, j: (i, 0)),   # x tile
                pl.BlockSpec((tb, H_pad), lambda i, j: (i, 0)),   # h tile
                w_spec((I_pad, th)),                              # W_ih^T cols
                w_spec((H_pad, th)),                              # W_hh^T cols
                w_spec((1, th)),                                  # fused bias
            ],
            out_specs=pl.BlockSpec((tb, th), lambda i, j: (i, j)),
            compiler_params=pltpu.CompilerParams(
                dimension_semantics=("parallel", "parallel"),
                vmem_limit_bytes=vmem_limit),
            cost_estimate=cost,
        )(x_p, h_p, w_ih, w_hh, b)

    out_pad = _call_with_fallback(_call,
                                  single_buffer_weights and weights_resident)

    if B_pad == B and H_pad == H:
        return out_pad
    return out_pad[:B, :H]


# --------------------------------------------------------------------------
# Fused T-step sequence (the big lever: weights never re-DMA per step)
# --------------------------------------------------------------------------
def base_rnn_sequence(xs, h0, packed, *, block_b=256, out_dtype=None,
                      single_buffer_weights=True):
    """Applies the cell over a whole sequence inside ONE pallas_call.

    xs: (T, B, input_size); h0: (B, hidden_size).
    Returns hs: (T, B, hidden_size) — hidden state after every step
    (hs[-1] is the final hidden state). Semantically equal to calling
    BaseRNNCell.forward T times.
    """
    w_ih, w_hh, b = packed
    T, B, I = xs.shape
    Bh, H = h0.shape
    assert Bh == B
    I_pad, H_pad = w_ih.shape
    assert w_hh.shape == (H_pad, H_pad) and b.shape == (1, H_pad)
    out_dtype = xs.dtype if out_dtype is None else out_dtype

    tb = min(block_b, _round_up(B, 8))
    B_pad = _round_up(B, tb)
    nb = B_pad // tb

    xs_p = xs if (B_pad == B and I_pad == I) else jnp.pad(
        xs, ((0, 0), (0, B_pad - B), (0, I_pad - I)))
    h0_p = h0 if (B_pad == B and H_pad == H) else jnp.pad(
        h0, ((0, B_pad - B), (0, H_pad - H)))

    cbytes = jnp.dtype(w_ih.dtype).itemsize
    xbytes = jnp.dtype(xs.dtype).itemsize
    hbytes = jnp.dtype(h0.dtype).itemsize
    obytes = jnp.dtype(out_dtype).itemsize

    def _footprint(w_bufs):
        return (w_bufs * ((I_pad + H_pad) * H_pad * cbytes + H_pad * 4)
                + 2 * tb * I_pad * xbytes + 2 * tb * H_pad * hbytes
                + 2 * tb * H_pad * obytes
                + tb * H_pad * 4)  # f32 hidden scratch

    cost = pl.CostEstimate(
        flops=2 * T * B_pad * (I_pad + H_pad) * H_pad,
        transcendentals=T * B_pad * H_pad,
        bytes_accessed=(T * B_pad * I_pad * xbytes + B_pad * H_pad * hbytes
                        + (I_pad + H_pad) * H_pad * cbytes + H_pad * 4
                        + T * B_pad * H_pad * obytes))

    def _call(use_single_buffer):
        w_bufs = 1 if use_single_buffer else 2
        vmem_limit = int(min(max(_footprint(w_bufs) + (4 << 20), 32 << 20),
                             128 << 20))

        def w_spec(shape):
            return _maybe_single_buffered_spec(shape, lambda i, t: (0, 0),
                                               use_single_buffer)

        return pl.pallas_call(
            _rnn_seq_kernel,
            out_shape=jax.ShapeDtypeStruct((T, B_pad, H_pad), out_dtype),
            grid=(nb, T),
            in_specs=[
                pl.BlockSpec((1, tb, I_pad), lambda i, t: (t, i, 0)),  # x_t
                pl.BlockSpec((tb, H_pad), lambda i, t: (i, 0)),        # h0
                w_spec((I_pad, H_pad)),                                # W_ih^T
                w_spec((H_pad, H_pad)),                                # W_hh^T
                w_spec((1, H_pad)),                                    # bias
            ],
            out_specs=pl.BlockSpec((1, tb, H_pad), lambda i, t: (t, i, 0)),
            scratch_shapes=[pltpu.VMEM((tb, H_pad), jnp.float32)],
            compiler_params=pltpu.CompilerParams(
                dimension_semantics=("parallel", "arbitrary"),
                vmem_limit_bytes=vmem_limit),
            cost_estimate=cost,
        )(xs_p, h0_p, w_ih, w_hh, b)

    hs_pad = _call_with_fallback(_call, single_buffer_weights)

    if B_pad == B and H_pad == H:
        return hs_pad
    return hs_pad[:, :B, :H]


# --------------------------------------------------------------------------
# Init matching BaseRNNCell.recurrent_init()
# --------------------------------------------------------------------------
def _init_params(key, input_size, hidden_size):
    k_ih, k_hh = jax.random.split(key)
    # xavier_uniform_ for weight_ih (hidden_size, input_size)
    limit = jnp.sqrt(6.0 / (hidden_size + input_size))
    weight_ih = jax.random.uniform(
        k_ih, (hidden_size, input_size), jnp.float32, -limit, limit)
    # orthogonal_ for weight_hh (hidden_size, hidden_size)
    a = jax.random.normal(k_hh, (hidden_size, hidden_size), jnp.float32)
    q, r = jnp.linalg.qr(a)
    s = jnp.sign(jnp.diag(r))
    s = jnp.where(s == 0, 1.0, s)   # guard degenerate zero diagonal
    weight_hh = q * s[None, :]
    bias_ih = jnp.zeros((hidden_size,), jnp.float32)
    bias_hh = jnp.zeros((hidden_size,), jnp.float32)
    return weight_ih, weight_hh, bias_ih, bias_hh


if __name__ == "__main__":
    key = jax.random.PRNGKey(0)
    k_param, k_x, k_h, k_seq = jax.random.split(key, 4)

    batch = 2
    input_size = 16
    hidden_size = 32
    seq_len = 8

    weight_ih, weight_hh, bias_ih, bias_hh = _init_params(
        k_param, input_size, hidden_size)
    x = jax.random.normal(k_x, (batch, input_size), jnp.float32)
    h = jax.random.normal(k_h, (batch, hidden_size), jnp.float32)
    xs = jax.random.normal(k_seq, (seq_len, batch, input_size), jnp.float32)

    # Pure-JAX reference (same semantics as the PyTorch forward).
    hp = jax.lax.Precision.HIGHEST

    def ref_step(h_prev, x_t):
        h_new = jnp.tanh(jnp.dot(x_t, weight_ih.T, precision=hp) + bias_ih
                         + jnp.dot(h_prev, weight_hh.T, precision=hp) + bias_hh)
        return h_new, h_new

    ref_cell = ref_step(h, x)[0]
    _, ref_seq = jax.lax.scan(ref_step, h, xs)

    # --- Exact f32 MXU path (single step) --------------------------------
    packed_f32 = pack_params(weight_ih, weight_hh, bias_ih, bias_hh,
                             compute_dtype=jnp.float32)
    out = jax.block_until_ready(base_rnn_cell(x, h, packed_f32))
    assert out.shape == (batch, hidden_size)
    assert jnp.allclose(out, ref_cell, atol=1e-5, rtol=1e-5)

    # --- bf16 MXU inputs (f32 accumulate + f32 tanh) — v6e/v7x default ---
    packed_bf16 = pack_params(weight_ih, weight_hh, bias_ih, bias_hh,
                              compute_dtype=jnp.bfloat16)
    out_bf16 = jax.block_until_ready(base_rnn_cell(x, h, packed_bf16))
    assert jnp.allclose(out_bf16, ref_cell, atol=5e-2, rtol=5e-2)

    # --- Fused T-step sequence kernel (weights VMEM-resident across steps)
    hs = jax.block_until_ready(base_rnn_sequence(xs, h, packed_f32))
    assert hs.shape == (seq_len, batch, hidden_size)
    assert jnp.allclose(hs, ref_seq, atol=5e-4, rtol=5e-4)

    hs_bf16 = jax.block_until_ready(base_rnn_sequence(xs, h, packed_bf16))
    assert jnp.allclose(hs_bf16, ref_seq, atol=1e-1, rtol=1e-1)

    print("KERNEL_OK")
</pallas_src>

<mosaic_0001>
module attributes {stable_mosaic.version = 11 : i64} {
  func.func @_rnn_cell_kernel(%arg0: i32, %arg1: i32, %arg2: memref<8x128xf32, #tpu.memory_space<vmem>>, %arg3: memref<8x128xf32, #tpu.memory_space<vmem>>, %arg4: memref<128x128xf32, #tpu.memory_space<vmem>>, %arg5: memref<128x128xf32, #tpu.memory_space<vmem>>, %arg6: memref<1x128xf32, #tpu.memory_space<vmem>>, %arg7: memref<8x128xf32, #tpu.memory_space<vmem>>) attributes {dimension_semantics = [#tpu.dimension_semantics<parallel>, #tpu.dimension_semantics<parallel>], iteration_bounds = array<i64: 1, 1>, scalar_prefetch = 0 : i64, scratch_operands = 0 : i64, tpu.core_type = #tpu.core_type<tc>, window_params = [{transform_indices = @transform_0, window_bounds = array<i64: 8, 128>}, {transform_indices = @transform_1, window_bounds = array<i64: 8, 128>}, {pipeline_mode = #tpu.pipeline_mode<synchronous>, transform_indices = @transform_2, window_bounds = array<i64: 128, 128>}, {pipeline_mode = #tpu.pipeline_mode<synchronous>, transform_indices = @transform_3, window_bounds = array<i64: 128, 128>}, {pipeline_mode = #tpu.pipeline_mode<synchronous>, transform_indices = @transform_4, window_bounds = array<i64: 1, 128>}, {transform_indices = @transform_5, window_bounds = array<i64: 8, 128>}]} {
    %c0 = arith.constant 0 : index
    %c0_0 = arith.constant 0 : index
    %0 = vector.load %arg2[%c0, %c0_0] : memref<8x128xf32, #tpu.memory_space<vmem>>, vector<8x128xf32>
    %c0_1 = arith.constant 0 : index
    %c0_2 = arith.constant 0 : index
    %1 = vector.load %arg4[%c0_1, %c0_2] : memref<128x128xf32, #tpu.memory_space<vmem>>, vector<128x128xf32>
    %cst = arith.constant dense<0.000000e+00> : vector<8x128xf32>
    %2 = tpu.matmul %0, %1, %cst {dimension_numbers = #tpu.dot_dimension_numbers<[1], [0], [0], [1], [0, 0, 1, 1], [], []>} : vector<8x128xf32>, vector<128x128xf32>, vector<8x128xf32> -> vector<8x128xf32>
    %c0_3 = arith.constant 0 : index
    %c0_4 = arith.constant 0 : index
    %3 = vector.load %arg3[%c0_3, %c0_4] : memref<8x128xf32, #tpu.memory_space<vmem>>, vector<8x128xf32>
    %c0_5 = arith.constant 0 : index
    %c0_6 = arith.constant 0 : index
    %4 = vector.load %arg5[%c0_5, %c0_6] : memref<128x128xf32, #tpu.memory_space<vmem>>, vector<128x128xf32>
    %cst_7 = arith.constant dense<0.000000e+00> : vector<8x128xf32>
    %5 = tpu.matmul %3, %4, %cst_7 {dimension_numbers = #tpu.dot_dimension_numbers<[1], [0], [0], [1], [0, 0, 1, 1], [], []>} : vector<8x128xf32>, vector<128x128xf32>, vector<8x128xf32> -> vector<8x128xf32>
    %6 = arith.addf %2, %5 : vector<8x128xf32>
    %c0_8 = arith.constant 0 : index
    %c0_9 = arith.constant 0 : index
    %7 = vector.load %arg6[%c0_8, %c0_9] : memref<1x128xf32, #tpu.memory_space<vmem>>, vector<1x128xf32>
    %8 = vector.broadcast %7 : vector<1x128xf32> to vector<8x128xf32>
    %9 = arith.addf %6, %8 : vector<8x128xf32>
    %10 = math.tanh %9 : vector<8x128xf32>
    %c0_10 = arith.constant 0 : index
    %c0_11 = arith.constant 0 : index
    %11 = vector.load %arg7[%c0_10, %c0_11] : memref<8x128xf32, #tpu.memory_space<vmem>>, vector<8x128xf32>
    tpu.vector_store %arg7[%c0_10, %c0_11], %10 {strides = array<i32>} : memref<8x128xf32, #tpu.memory_space<vmem>>, vector<8x128xf32>,
    return
  }
  func.func @transform_0(%arg0: i32, %arg1: i32) -> (i32, i32) {
    %c0_i32 = arith.constant 0 : i32
    %c0_i32_0 = arith.constant 0 : i32
    return %arg0, %c0_i32 : i32, i32
  }
  func.func @transform_1(%arg0: i32, %arg1: i32) -> (i32, i32) {
    %c0_i32 = arith.constant 0 : i32
    %c0_i32_0 = arith.constant 0 : i32
    return %arg0, %c0_i32 : i32, i32
  }
  func.func @transform_2(%arg0: i32, %arg1: i32) -> (i32, i32) {
    %c0_i32 = arith.constant 0 : i32
    %c0_i32_0 = arith.constant 0 : i32
    return %c0_i32, %arg1 : i32, i32
  }
  func.func @transform_3(%arg0: i32, %arg1: i32) -> (i32, i32) {
    %c0_i32 = arith.constant 0 : i32
    %c0_i32_0 = arith.constant 0 : i32
    return %c0_i32, %arg1 : i32, i32
  }
  func.func @transform_4(%arg0: i32, %arg1: i32) -> (i32, i32) {
    %c0_i32 = arith.constant 0 : i32
    %c0_i32_0 = arith.constant 0 : i32
    return %c0_i32, %arg1 : i32, i32
  }
  func.func @transform_5(%arg0: i32, %arg1: i32) -> (i32, i32) {
    %c0_i32 = arith.constant 0 : i32
    return %arg0, %arg1 : i32, i32
  }
}

module attributes {stable_mosaic.version = 11 : i64} {
  func.func @_rnn_cell_kernel(%arg0: i32, %arg1: i32, %arg2: memref<8x128xf32, #tpu.memory_space<vmem>>, %arg3: memref<8x128xf32, #tpu.memory_space<vmem>>, %arg4: memref<128x128xf32, #tpu.memory_space<vmem>>, %arg5: memref<128x128xf32, #tpu.memory_space<vmem>>, %arg6: memref<1x128xf32, #tpu.memory_space<vmem>>, %arg7: memref<8x128xf32, #tpu.memory_space<vmem>>) attributes {dimension_semantics = [#tpu.dimension_semantics<parallel>, #tpu.dimension_semantics<parallel>], iteration_bounds = array<i64: 1, 1>, scalar_prefetch = 0 : i64, scratch_operands = 0 : i64, tpu.core_type = #tpu.core_type<tc>, window_params = [{transform_indices = @transform_0, window_bounds = array<i64: 8, 128>}, {transform_indices = @transform_1, window_bounds = array<i64: 8, 128>}, {transform_indices = @transform_2, window_bounds = array<i64: 128, 128>}, {transform_indices = @transform_3, window_bounds = array<i64: 128, 128>}, {transform_indices = @transform_4, window_bounds = array<i64: 1, 128>}, {transform_indices = @transform_5, window_bounds = array<i64: 8, 128>}]} {
    %c0 = arith.constant 0 : index
    %c0_0 = arith.constant 0 : index
    %0 = vector.load %arg2[%c0, %c0_0] : memref<8x128xf32, #tpu.memory_space<vmem>>, vector<8x128xf32>
    %c0_1 = arith.constant 0 : index
    %c0_2 = arith.constant 0 : index
    %1 = vector.load %arg4[%c0_1, %c0_2] : memref<128x128xf32, #tpu.memory_space<vmem>>, vector<128x128xf32>
    %cst = arith.constant dense<0.000000e+00> : vector<8x128xf32>
    %2 = tpu.matmul %0, %1, %cst {dimension_numbers = #tpu.dot_dimension_numbers<[1], [0], [0], [1], [0, 0, 1, 1], [], []>} : vector<8x128xf32>, vector<128x128xf32>, vector<8x128xf32> -> vector<8x128xf32>
    %c0_3 = arith.constant 0 : index
    %c0_4 = arith.constant 0 : index
    %3 = vector.load %arg3[%c0_3, %c0_4] : memref<8x128xf32, #tpu.memory_space<vmem>>, vector<8x128xf32>
    %c0_5 = arith.constant 0 : index
    %c0_6 = arith.constant 0 : index
    %4 = vector.load %arg5[%c0_5, %c0_6] : memref<128x128xf32, #tpu.memory_space<vmem>>, vector<128x128xf32>
    %cst_7 = arith.constant dense<0.000000e+00> : vector<8x128xf32>
    %5 = tpu.matmul %3, %4, %cst_7 {dimension_numbers = #tpu.dot_dimension_numbers<[1], [0], [0], [1], [0, 0, 1, 1], [], []>} : vector<8x128xf32>, vector<128x128xf32>, vector<8x128xf32> -> vector<8x128xf32>
    %6 = arith.addf %2, %5 : vector<8x128xf32>
    %c0_8 = arith.constant 0 : index
    %c0_9 = arith.constant 0 : index
    %7 = vector.load %arg6[%c0_8, %c0_9] : memref<1x128xf32, #tpu.memory_space<vmem>>, vector<1x128xf32>
    %8 = vector.broadcast %7 : vector<1x128xf32> to vector<8x128xf32>
    %9 = arith.addf %6, %8 : vector<8x128xf32>
    %10 = math.tanh %9 : vector<8x128xf32>
    %c0_10 = arith.constant 0 : index
    %c0_11 = arith.constant 0 : index
    %11 = vector.load %arg7[%c0_10, %c0_11] : memref<8x128xf32, #tpu.memory_space<vmem>>, vector<8x128xf32>
    tpu.vector_store %arg7[%c0_10, %c0_11], %10 {strides = array<i32>} : memref<8x128xf32, #tpu.memory_space<vmem>>, vector<8x128xf32>,
    return
  }
  func.func @transform_0(%arg0: i32, %arg1: i32) -> (i32, i32) {
    %c0_i32 = arith.constant 0 : i32
    %c0_i32_0 = arith.constant 0 : i32
    return %arg0, %c0_i32 : i32, i32
  }
  func.func @transform_1(%arg0: i32, %arg1: i32) -> (i32, i32) {
    %c0_i32 = arith.constant 0 : i32
    %c0_i32_0 = arith.constant 0 : i32
    return %arg0, %c0_i32 : i32, i32
  }
  func.func @transform_2(%arg0: i32, %arg1: i32) -> (i32, i32) {
    %c0_i32 = arith.constant 0 : i32
    %c0_i32_0 = arith.constant 0 : i32
    return %c0_i32, %arg1 : i32, i32
  }
  func.func @transform_3(%arg0: i32, %arg1: i32) -> (i32, i32) {
    %c0_i32 = arith.constant 0 : i32
    %c0_i32_0 = arith.constant 0 : i32
    return %c0_i32, %arg1 : i32, i32
  }
  func.func @transform_4(%arg0: i32, %arg1: i32) -> (i32, i32) {
    %c0_i32 = arith.constant 0 : i32
    %c0_i32_0 = arith.constant 0 : i32
    return %c0_i32, %arg1 : i32, i32
  }
  func.func @transform_5(%arg0: i32, %arg1: i32) -> (i32, i32) {
    %c0_i32 = arith.constant 0 : i32
    return %arg0, %arg1 : i32, i32
  }
}

</mosaic_0001>

<bundles_post_ra>
// kernel: tpu_custom_call.1
= control target key start
LH: loop header
LB: loop body
LE: loop exit
PB: predicated region body
PF: predicated region fallthrough
CT: control target
= control target key end

     0   :  { %10 = vsyncpa [#allocation3], 0  ;;  %s373_s0 = inlined_call_operand.hbm [shape: f32[8,128], index: 0, kind: input, shape index: {}]   ;;  %s374_s1 = inlined_call_operand.hbm [shape: f32[8,128], index: 1, kind: input, shape index: {}]   ;;  %s375_s2 = inlined_call_operand.hbm [shape: f32[128,128], index: 2, kind: input, shape index: {}]   ;;  %s376_s3 = inlined_call_operand.hbm [shape: f32[128,128], index: 3, kind: input, shape index: {}]   ;;  %s377_s4 = inlined_call_operand.vmem [shape: f32[1,128], index: 4, kind: input, shape index: {}]   ;;  %s378_s5 = inlined_call_operand.hbm [shape: f32[8,128], index: 5, kind: output, shape index: {}]  }
   0x1   :  { %11 = vsyncpa [#allocation6], 0 }
   0x2   :  { %12 = vsyncpa [#allocation9], 0  ;;  %s30_s20 = sshll.u32 %s374_s1, 4  ;;  %s31_s20 = int_to_ptr.hbm [resolvable:$true] %s30_s20 }
   0x3   :  { %13 = vsyncpa [#allocation4], 0  ;;  %s318_s21 = smov [#allocation5]   ;;  %s19_s25 = sshll.u32 %s373_s0, 4  ;;  %s20_s25 = int_to_ptr.hbm [resolvable:$true] %s19_s25 }
   0x4   :  { %s32_s22 = sshll.u32 %s318_s21, 4  ;;  %s319_s26 = smov [#allocation2]   ;;  %s33_s22 = int_to_ptr.vmem [resolvable:$true] %s32_s22 }
   0x5   :  { %35 = dma.hbm_to_vmem [thread:$0]  %s31_s20, 128, %s33_s22, [#allocation6]  }
   0x6   :  { %s21_s27 = sshll.u32 %s319_s26, 4  ;;  %s40_s30 = sshll.u32 %s375_s2, 4  ;;  %s22_s27 = int_to_ptr.vmem [resolvable:$true] %s21_s27  ;;  %s41_s30 = int_to_ptr.hbm [resolvable:$true] %s40_s30 }
   0x7   :  { %24 = dma.hbm_to_vmem [thread:$0]  %s20_s25, 128, %s22_s27, [#allocation3]  }
   0x8   :  { %s320_s1 = smov [#allocation7]   ;;  %s53_s9 = sshll.u32 %s376_s3, 4  ;;  %s54_s9 = int_to_ptr.hbm [resolvable:$true] %s53_s9 }
   0x9   :  { %s42_s6 = sshll.u32 %s320_s1, 4  ;;  %s321_s10 = smov 128   ;;  %s43_s6 = int_to_ptr.vmem [resolvable:$true] %s42_s6 }
   0xa   :  { %s322_s0 = smov 8   ;;  %s323_s11 = smov [#allocation8]  }
   0xb   :  { %48 = dma.hbm_to_vmem [thread:$0]  %s41_s30, 2048, %s43_s6, [#allocation6], %s321_s10, %s321_s10, %s322_s0  }
   0xc   :  { %s55_s12 = sshll.u32 %s323_s11, 4  ;;  %s56_s12 = int_to_ptr.vmem [resolvable:$true] %s55_s12 }
   0xd   :  { %61 = dma.hbm_to_vmem [thread:$0]  %s54_s9, 2048, %s56_s12, [#allocation9], %s321_s10, %s321_s10, %s322_s0  }
   0xe   :  { %310 = dma.done.wait [#allocation3], 128  }
   0xf   :  { %311 = vsyncadd [#allocation3], 4294967168 }
  0x10   :  { %312 = dma.done.wait [#allocation6], 2176  }
  0x11   :  { %313 = vsyncadd [#allocation6], 4294965120 }
  0x12   :  { %314 = dma.done.wait [#allocation9], 2048  }
  0x13   :  { %315 = vsyncadd [#allocation9], 4294965248  ;;  %v113_v0 = vld [vmem:[#allocation8 + $0x78] sm:$0xff]  ;;  %v112_v2 = vld [vmem:[#allocation8 + $0x70] sm:$0xff]  ;;  %s324_s13 = smov [#allocation10]   ;;  %s168_s17 = sshll.u32 %s378_s5, 4  ;;  %s169_s17 = int_to_ptr.hbm [resolvable:$true] %s168_s17 }
  0x14   :  { %v96_v1 = vld [vmem:[#allocation7 + $0x78] sm:$0xff]  ;;  %114 = vmatpush.msra.mxu0 %v113_v0  ;;  %v95_v3 = vld [vmem:[#allocation7 + $0x70] sm:$0xff]  ;;  %v111_v4 = vld [vmem:[#allocation8 + $0x68] sm:$0xff]  ;;  %s166_s14 = sshll.u32 %s324_s13, 4  ;;  %s167_s14 = int_to_ptr.vmem [resolvable:$true] %s166_s14 }
  0x15   :  { %134 = vmatpush.msra.mxu1 %v96_v1  ;;  %v94_v5 = vld [vmem:[#allocation7 + $0x68] sm:$0xff]  ;;  %v110_v6 = vld [vmem:[#allocation8 + $0x60] sm:$0xff]  ;;  %v109_v8 = vld [vmem:[#allocation8 + $0x58] sm:$0xff] }
  0x16   :  { %115 = vmatpush.msra.mxu0 %v112_v2  ;;  %v93_v7 = vld [vmem:[#allocation7 + $0x60] sm:$0xff]  ;;  %v92_v9 = vld [vmem:[#allocation7 + $0x58] sm:$0xff]  ;;  %v108_v10 = vld [vmem:[#allocation8 + $0x50] sm:$0xff] }
  0x17   :  { %135 = vmatpush.msra.mxu1 %v95_v3  ;;  %v91_v11 = vld [vmem:[#allocation7 + $0x50] sm:$0xff]  ;;  %v107_v12 = vld [vmem:[#allocation8 + $0x48] sm:$0xff]  ;;  %v106_v14 = vld [vmem:[#allocation8 + $0x40] sm:$0xff] }
  0x18   :  { %116 = vmatpush.msra.mxu0 %v111_v4  ;;  %v90_v13 = vld [vmem:[#allocation7 + $0x48] sm:$0xff]  ;;  %v89_v15 = vld [vmem:[#allocation7 + $0x40] sm:$0xff]  ;;  %v105_v16 = vld [vmem:[#allocation8 + $0x38] sm:$0xff] }
  0x19   :  { %136 = vmatpush.msra.mxu1 %v94_v5  ;;  %v88_v17 = vld [vmem:[#allocation7 + $0x38] sm:$0xff]  ;;  %v104_v18 = vld [vmem:[#allocation8 + $0x30] sm:$0xff]  ;;  %v103_v20 = vld [vmem:[#allocation8 + $0x28] sm:$0xff] }
  0x1a   :  { %117 = vmatpush.msra.mxu0 %v110_v6  ;;  %v87_v19 = vld [vmem:[#allocation7 + $0x30] sm:$0xff]  ;;  %v86_v21 = vld [vmem:[#allocation7 + $0x28] sm:$0xff]  ;;  %v102_v22 = vld [vmem:[#allocation8 + $0x20] sm:$0xff] }
  0x1b   :  { %137 = vmatpush.msra.mxu1 %v93_v7  ;;  %v85_v23 = vld [vmem:[#allocation7 + $0x20] sm:$0xff]  ;;  %v101_v24 = vld [vmem:[#allocation8 + $0x18] sm:$0xff]  ;;  %v100_v26 = vld [vmem:[#allocation8 + $0x10] sm:$0xff] }
  0x1c   :  { %118 = vmatpush.msra.mxu0 %v109_v8  ;;  %v84_v25 = vld [vmem:[#allocation7 + $0x18] sm:$0xff]  ;;  %v83_v27 = vld [vmem:[#allocation7 + $0x10] sm:$0xff]  ;;  %v99_v28 = vld [vmem:[#allocation8 + $0x8] sm:$0xff] }
  0x1d   :  { %138 = vmatpush.msra.mxu1 %v92_v9  ;;  %v82_v29 = vld [vmem:[#allocation7 + $0x8] sm:$0xff]  ;;  %v98_v30 = vld [vmem:[#allocation8] sm:$0xff]  ;;  %v97_v32 = vld [vmem:[#allocation5] sm:$0xff] }
  0x1e   :  { %119 = vmatpush.msra.mxu0 %v108_v10  ;;  %v81_v31 = vld [vmem:[#allocation7] sm:$0xff]  ;;  %v80_v33 = vld [vmem:[#allocation2] sm:$0xff] }
  0x1f   :  { %139 = vmatpush.msra.mxu1 %v91_v11  ;;  %v187_v34 = vld [vmem:[%s377_s4] ss:$0 sm:$0xff] }
  0x20   :  { %120 = vmatpush.msra.mxu0 %v107_v12 }
  0x21   :  { %140 = vmatpush.msra.mxu1 %v90_v13 }
  0x22   :  { %121 = vmatpush.msra.mxu0 %v106_v14 }
  0x23   :  { %141 = vmatpush.msra.mxu1 %v89_v15 }
  0x24   :  { %122 = vmatpush.msra.mxu0 %v105_v16 }
  0x25   :  { %142 = vmatpush.msra.mxu1 %v88_v17 }
  0x26   :  { %123 = vmatpush.msra.mxu0 %v104_v18 }
  0x27   :  { %143 = vmatpush.msra.mxu1 %v87_v19 }
  0x28   :  { %124 = vmatpush.msra.mxu0 %v103_v20 }
  0x29   :  { %144 = vmatpush.msra.mxu1 %v86_v21 }
  0x2a   :  { %125 = vmatpush.msra.mxu0 %v102_v22 }
  0x2b   :  { %145 = vmatpush.msra.mxu1 %v85_v23 }
  0x2c   :  { %126 = vmatpush.msra.mxu0 %v101_v24 }
  0x2d   :  { %146 = vmatpush.msra.mxu1 %v84_v25 }
  0x2e   :  { %127 = vmatpush.msra.mxu0 %v100_v26 }
  0x2f   :  { %147 = vmatpush.msra.mxu1 %v83_v27 }
  0x30   :  { %128 = vmatpush.msra.mxu0 %v99_v28 }
  0x31   :  { %148 = vmatpush.msra.mxu1 %v82_v29 }
  0x32   :  { %129 = vmatpush.msra.mxu0 %v98_v30 }
  0x33   :  { %149 = vmatpush.msra.mxu1 %v81_v31  ;;  %130 = vmatmul.f32.vlgmr.msra.gmra.mxu0 %v97_v32 }
  0x34   :  { %150 = vmatmul.f32.vlgmr.msra.gmra.mxu1 %v80_v33 }
  0xb0   :  { %v131_v35 = vpop.f32.mrf.mxu0 }
  0xb1   :  { %v151_v36 = vpop.f32.mrf.mxu1 }
  0xb2   :  { %v152_v37 = vadd.f32 %v151_v36, %v131_v35 }
  0xb4   :  { %v158_v38 = vadd.f32 %v187_v34, %v152_v37 }
  0xb6   :  { %188 = vtanh.f32 %v158_v38 }
  0xbc   :  { %v189_v39 = vpop.eup %188 }
  0xbd   :  { %160 = vst [vmem:[#allocation10] sm:$0xff] %v189_v39 }
  0xbe   :  { %171 = dma.vmem_to_hbm [thread:$0]  %s167_s14, 128, %s169_s17, [#allocation4]  }
  0xbf   :  { %316 = dma.done.wait [#allocation4], 128  }
  0xc0   :  { %317 = vsyncadd [#allocation4], 4294967168 }
  0xc1   :  { %176 = vsyncpa [#allocation3], 1 }
  0xc2   :  { %177 = vsyncpa [#allocation6], 1 }
  0xc3   :  { %178 = vsyncpa [#allocation9], 1 }
  0xc4   :  { %179 = vsyncpa [#allocation4], 1 }

// kernel: tpu_custom_call.1
= control target key start
LH: loop header
LB: loop body
LE: loop exit
PB: predicated region body
PF: predicated region fallthrough
CT: control target
= control target key end

     0   :  { %10 = vsyncpa [#allocation3], 0  ;;  %s373_s0 = inlined_call_operand.hbm [shape: f32[8,128], index: 0, kind: input, shape index: {}]   ;;  %s374_s1 = inlined_call_operand.hbm [shape: f32[8,128], index: 1, kind: input, shape index: {}]   ;;  %s375_s2 = inlined_call_operand.hbm [shape: f32[128,128], index: 2, kind: input, shape index: {}]   ;;  %s376_s3 = inlined_call_operand.hbm [shape: f32[128,128], index: 3, kind: input, shape index: {}]   ;;  %s377_s4 = inlined_call_operand.vmem [shape: f32[1,128], index: 4, kind: input, shape index: {}]   ;;  %s378_s5 = inlined_call_operand.hbm [shape: f32[8,128], index: 5, kind: output, shape index: {}]  }
   0x1   :  { %11 = vsyncpa [#allocation6], 0 }
   0x2   :  { %12 = vsyncpa [#allocation9], 0  ;;  %s30_s20 = sshll.u32 %s374_s1, 4  ;;  %s31_s20 = int_to_ptr.hbm [resolvable:$true] %s30_s20 }
   0x3   :  { %13 = vsyncpa [#allocation4], 0  ;;  %s318_s21 = smov [#allocation5]   ;;  %s19_s25 = sshll.u32 %s373_s0, 4  ;;  %s20_s25 = int_to_ptr.hbm [resolvable:$true] %s19_s25 }
   0x4   :  { %s32_s22 = sshll.u32 %s318_s21, 4  ;;  %s319_s26 = smov [#allocation2]   ;;  %s33_s22 = int_to_ptr.vmem [resolvable:$true] %s32_s22 }
   0x5   :  { %35 = dma.hbm_to_vmem [thread:$0]  %s31_s20, 128, %s33_s22, [#allocation6]  }
   0x6   :  { %s21_s27 = sshll.u32 %s319_s26, 4  ;;  %s40_s30 = sshll.u32 %s375_s2, 4  ;;  %s22_s27 = int_to_ptr.vmem [resolvable:$true] %s21_s27  ;;  %s41_s30 = int_to_ptr.hbm [resolvable:$true] %s40_s30 }
   0x7   :  { %24 = dma.hbm_to_vmem [thread:$0]  %s20_s25, 128, %s22_s27, [#allocation3]  }
   0x8   :  { %s320_s1 = smov [#allocation7]   ;;  %s53_s9 = sshll.u32 %s376_s3, 4  ;;  %s54_s9 = int_to_ptr.hbm [resolvable:$true] %s53_s9 }
   0x9   :  { %s42_s6 = sshll.u32 %s320_s1, 4  ;;  %s321_s10 = smov 128   ;;  %s43_s6 = int_to_ptr.vmem [resolvable:$true] %s42_s6 }
   0xa   :  { %s322_s0 = smov 8   ;;  %s323_s11 = smov [#allocation8]  }
   0xb   :  { %48 = dma.hbm_to_vmem [thread:$0]  %s41_s30, 2048, %s43_s6, [#allocation6], %s321_s10, %s321_s10, %s322_s0  }
   0xc   :  { %s55_s12 = sshll.u32 %s323_s11, 4  ;;  %s56_s12 = int_to_ptr.vmem [resolvable:$true] %s55_s12 }
   0xd   :  { %61 = dma.hbm_to_vmem [thread:$0]  %s54_s9, 2048, %s56_s12, [#allocation9], %s321_s10, %s321_s10, %s322_s0  }
   0xe   :  { %310 = dma.done.wait [#allocation3], 128  }
   0xf   :  { %311 = vsyncadd [#allocation3], 4294967168 }
  0x10   :  { %312 = dma.done.wait [#allocation6], 2176  }
  0x11   :  { %313 = vsyncadd [#allocation6], 4294965120 }
  0x12   :  { %314 = dma.done.wait [#allocation9], 2048  }
  0x13   :  { %315 = vsyncadd [#allocation9], 4294965248  ;;  %v113_v0 = vld [vmem:[#allocation8 + $0x78] sm:$0xff]  ;;  %v112_v2 = vld [vmem:[#allocation8 + $0x70] sm:$0xff]  ;;  %s324_s13 = smov [#allocation10]   ;;  %s168_s17 = sshll.u32 %s378_s5, 4  ;;  %s169_s17 = int_to_ptr.hbm [resolvable:$true] %s168_s17 }
  0x14   :  { %v96_v1 = vld [vmem:[#allocation7 + $0x78] sm:$0xff]  ;;  %114 = vmatpush.msra.mxu0 %v113_v0  ;;  %v95_v3 = vld [vmem:[#allocation7 + $0x70] sm:$0xff]  ;;  %v111_v4 = vld [vmem:[#allocation8 + $0x68] sm:$0xff]  ;;  %s166_s14 = sshll.u32 %s324_s13, 4  ;;  %s167_s14 = int_to_ptr.vmem [resolvable:$true] %s166_s14 }
  0x15   :  { %134 = vmatpush.msra.mxu1 %v96_v1  ;;  %v94_v5 = vld [vmem:[#allocation7 + $0x68] sm:$0xff]  ;;  %v110_v6 = vld [vmem:[#allocation8 + $0x60] sm:$0xff]  ;;  %v109_v8 = vld [vmem:[#allocation8 + $0x58] sm:$0xff] }
  0x16   :  { %115 = vmatpush.msra.mxu0 %v112_v2  ;;  %v93_v7 = vld [vmem:[#allocation7 + $0x60] sm:$0xff]  ;;  %v92_v9 = vld [vmem:[#allocation7 + $0x58] sm:$0xff]  ;;  %v108_v10 = vld [vmem:[#allocation8 + $0x50] sm:$0xff] }
  0x17   :  { %135 = vmatpush.msra.mxu1 %v95_v3  ;;  %v91_v11 = vld [vmem:[#allocation7 + $0x50] sm:$0xff]  ;;  %v107_v12 = vld [vmem:[#allocation8 + $0x48] sm:$0xff]  ;;  %v106_v14 = vld [vmem:[#allocation8 + $0x40] sm:$0xff] }
  0x18   :  { %116 = vmatpush.msra.mxu0 %v111_v4  ;;  %v90_v13 = vld [vmem:[#allocation7 + $0x48] sm:$0xff]  ;;  %v89_v15 = vld [vmem:[#allocation7 + $0x40] sm:$0xff]  ;;  %v105_v16 = vld [vmem:[#allocation8 + $0x38] sm:$0xff] }
  0x19   :  { %136 = vmatpush.msra.mxu1 %v94_v5  ;;  %v88_v17 = vld [vmem:[#allocation7 + $0x38] sm:$0xff]  ;;  %v104_v18 = vld [vmem:[#allocation8 + $0x30] sm:$0xff]  ;;  %v103_v20 = vld [vmem:[#allocation8 + $0x28] sm:$0xff] }
  0x1a   :  { %117 = vmatpush.msra.mxu0 %v110_v6  ;;  %v87_v19 = vld [vmem:[#allocation7 + $0x30] sm:$0xff]  ;;  %v86_v21 = vld [vmem:[#allocation7 + $0x28] sm:$0xff]  ;;  %v102_v22 = vld [vmem:[#allocation8 + $0x20] sm:$0xff] }
  0x1b   :  { %137 = vmatpush.msra.mxu1 %v93_v7  ;;  %v85_v23 = vld [vmem:[#allocation7 + $0x20] sm:$0xff]  ;;  %v101_v24 = vld [vmem:[#allocation8 + $0x18] sm:$0xff]  ;;  %v100_v26 = vld [vmem:[#allocation8 + $0x10] sm:$0xff] }
  0x1c   :  { %118 = vmatpush.msra.mxu0 %v109_v8  ;;  %v84_v25 = vld [vmem:[#allocation7 + $0x18] sm:$0xff]  ;;  %v83_v27 = vld [vmem:[#allocation7 + $0x10] sm:$0xff]  ;;  %v99_v28 = vld [vmem:[#allocation8 + $0x8] sm:$0xff] }
  0x1d   :  { %138 = vmatpush.msra.mxu1 %v92_v9  ;;  %v82_v29 = vld [vmem:[#allocation7 + $0x8] sm:$0xff]  ;;  %v98_v30 = vld [vmem:[#allocation8] sm:$0xff]  ;;  %v97_v32 = vld [vmem:[#allocation5] sm:$0xff] }
  0x1e   :  { %119 = vmatpush.msra.mxu0 %v108_v10  ;;  %v81_v31 = vld [vmem:[#allocation7] sm:$0xff]  ;;  %v80_v33 = vld [vmem:[#allocation2] sm:$0xff] }
  0x1f   :  { %139 = vmatpush.msra.mxu1 %v91_v11  ;;  %v187_v34 = vld [vmem:[%s377_s4] ss:$0 sm:$0xff] }
  0x20   :  { %120 = vmatpush.msra.mxu0 %v107_v12 }
  0x21   :  { %140 = vmatpush.msra.mxu1 %v90_v13 }
  0x22   :  { %121 = vmatpush.msra.mxu0 %v106_v14 }
  0x23   :  { %141 = vmatpush.msra.mxu1 %v89_v15 }
  0x24   :  { %122 = vmatpush.msra.mxu0 %v105_v16 }
  0x25   :  { %142 = vmatpush.msra.mxu1 %v88_v17 }
  0x26   :  { %123 = vmatpush.msra.mxu0 %v104_v18 }
  0x27   :  { %143 = vmatpush.msra.mxu1 %v87_v19 }
  0x28   :  { %124 = vmatpush.msra.mxu0 %v103_v20 }
  0x29   :  { %144 = vmatpush.msra.mxu1 %v86_v21 }
  0x2a   :  { %125 = vmatpush.msra.mxu0 %v102_v22 }
  0x2b   :  { %145 = vmatpush.msra.mxu1 %v85_v23 }
  0x2c   :  { %126 = vmatpush.msra.mxu0 %v101_v24 }
  0x2d   :  { %146 = vmatpush.msra.mxu1 %v84_v25 }
  0x2e   :  { %127 = vmatpush.msra.mxu0 %v100_v26 }
  0x2f   :  { %147 = vmatpush.msra.mxu1 %v83_v27 }
  0x30   :  { %128 = vmatpush.msra.mxu0 %v99_v28 }
  0x31   :  { %148 = vmatpush.msra.mxu1 %v82_v29 }
  0x32   :  { %129 = vmatpush.msra.mxu0 %v98_v30 }
  0x33   :  { %149 = vmatpush.msra.mxu1 %v81_v31  ;;  %130 = vmatmul.f32.vlgmr.msra.gmra.mxu0 %v97_v32 }
  0x34   :  { %150 = vmatmul.f32.vlgmr.msra.gmra.mxu1 %v80_v33 }
  0xb0   :  { %v131_v35 = vpop.f32.mrf.mxu0 }
  0xb1   :  { %v151_v36 = vpop.f32.mrf.mxu1 }
  0xb2   :  { %v152_v37 = vadd.f32 %v151_v36, %v131_v35 }
  0xb4   :  { %v158_v38 = vadd.f32 %v187_v34, %v152_v37 }
  0xb6   :  { %188 = vtanh.f32 %v158_v38 }
  0xbc   :  { %v189_v39 = vpop.eup %188 }
  0xbd   :  { %160 = vst [vmem:[#allocation10] sm:$0xff] %v189_v39 }
  0xbe   :  { %171 = dma.vmem_to_hbm [thread:$0]  %s167_s14, 128, %s169_s17, [#allocation4]  }
  0xbf   :  { %316 = dma.done.wait [#allocation4], 128  }
  0xc0   :  { %317 = vsyncadd [#allocation4], 4294967168 }
  0xc1   :  { %176 = vsyncpa [#allocation3], 1 }
  0xc2   :  { %177 = vsyncpa [#allocation6], 1 }
  0xc3   :  { %178 = vsyncpa [#allocation9], 1 }
  0xc4   :  { %179 = vsyncpa [#allocation4], 1 }

</bundles_post_ra>
